<compile_context>
chip_gen: v7x
topology: tpu7x:2x2x1
jax: 0.10.0
libtpu: 0.0.40
codegen_flags: <defaults>
</compile_context>

<pallas_src>
import math

import jax
import jax.numpy as jnp
from jax.experimental import pallas as pl
from jax.experimental.pallas import tpu as pltpu

H1, H2 = 96, 64          # hidden widths from the PyTorch module
LANE = 128               # lane width (last-dim tile)
SUBLANE = 8              # sublane granularity (second-to-last dim)
TILE_B_MAX = 8192        # hard cap on the batch tile


def _round_up(n, m):
    return ((n + m - 1) // m) * m


def _encoder_kernel(x_ref, w1_ref, b1_ref, w2_ref, b2_ref, w3_ref, b3_ref, o_ref):
    cdt = w1_ref.dtype                        # compute dtype (bf16)
    x = x_ref[...].astype(cdt)

    # Layer 1: Linear(init_size, 96 [padded to 128]) + ReLU.
    # MXU accumulates in f32; bias-add + ReLU run on packed bf16 vregs
    # (half the VALU work of the f32 path; padded lanes are zero so ReLU on
    # them is a no-op).
    h1 = jnp.dot(x, w1_ref[...], preferred_element_type=jnp.float32).astype(cdt)
    h1 = jnp.maximum(h1 + b1_ref[...], 0.0)

    # Layer 2: Linear(96 -> 64 [padded to 128]) + ReLU.
    h2 = jnp.dot(h1, w2_ref[...], preferred_element_type=jnp.float32).astype(cdt)
    h2 = jnp.maximum(h2 + b2_ref[...], 0.0)

    # Layer 3: Linear(64 -> lat_size), no activation.  f32 bias-add, f32 store
    # (final layer is not rounded to bf16).
    z = jnp.dot(h2, w3_ref[...], preferred_element_type=jnp.float32)
    o_ref[...] = (z + b3_ref[...]).astype(o_ref.dtype)


def _vmem_plan():
    """(working-set budget, scoped-VMEM limit) per TPU generation."""
    try:
        kind = jax.devices()[0].device_kind.lower()
    except Exception:  # pragma: no cover - be robust on unknown backends
        kind = ""
    if "v5" in kind or "v6" in kind:          # 128 MiB physical VMEM
        return 48 * 1024 * 1024, 64 * 1024 * 1024
    # v7x (64 MiB physical) and anything unknown: stay conservative.
    return 24 * 1024 * 1024, 32 * 1024 * 1024


def _pick_tile_b(B, init_size, lat_size, budget):
    # Per-row VMEM: double-buffered f32 x tile + double-buffered f32 out tile
    # + ~3 lane-wide f32 temporaries (h1/h2/z and their bf16 copies).
    bytes_per_row = 2 * init_size * 4 + 2 * lat_size * 4 + 3 * LANE * 4
    tile_b = max(SUBLANE, (budget // bytes_per_row) // SUBLANE * SUBLANE)
    tile_b = min(tile_b, TILE_B_MAX)
    # Keep >= 2 grid steps when the batch allows it: shards the "parallel"
    # batch axis over both v7x TensorCores and gives the BlockSpec pipeline
    # something to double-buffer.
    if B > SUBLANE:
        tile_b = min(tile_b, _round_up((B + 1) // 2, SUBLANE))
    return max(SUBLANE, min(tile_b, _round_up(B, SUBLANE)))


@jax.jit
def encoder_forward(x, params):
    """x: (B, init_size) f32. params: padded kernel params from init_params()."""
    w1, b1 = params["w1"], params["b1"]
    w2, b2 = params["w2"], params["b2"]
    w3, b3 = params["w3"], params["b3"]

    B, init_size = x.shape
    lat_size = w3.shape[1]                    # w3 last dim is the true lat_size

    budget, vmem_limit = _vmem_plan()
    tile_b = _pick_tile_b(B, init_size, lat_size, budget)
    grid = (pl.cdiv(B, tile_b),)              # ragged last block: rows independent

    def resident(shape):                      # weights/biases stay in VMEM all steps
        return pl.BlockSpec(shape, lambda i: (0, 0))

    flops = 2 * B * (init_size * H1 + H1 * H2 + H2 * lat_size)
    bytes_accessed = (
        B * init_size * x.dtype.itemsize
        + B * lat_size * 4
        + sum(int(a.size) * a.dtype.itemsize for a in (w1, b1, w2, b2, w3, b3))
    )

    return pl.pallas_call(
        _encoder_kernel,
        out_shape=jax.ShapeDtypeStruct((B, lat_size), jnp.float32),
        grid=grid,
        in_specs=[
            pl.BlockSpec((tile_b, init_size), lambda i: (i, 0)),   # x tile
            resident(w1.shape), resident(b1.shape),
            resident(w2.shape), resident(b2.shape),
            resident(w3.shape), resident(b3.shape),
        ],
        out_specs=pl.BlockSpec((tile_b, lat_size), lambda i: (i, 0)),
        compiler_params=pltpu.CompilerParams(
            dimension_semantics=("parallel",),   # shard batch over both v7x TCs
            vmem_limit_bytes=vmem_limit,
        ),
        cost_estimate=pl.CostEstimate(
            flops=flops, transcendentals=0, bytes_accessed=bytes_accessed),
    )(x, w1, b1, w2, b2, w3, b3)


def init_params(key, init_size, lat_size, compute_dtype=jnp.bfloat16):
    """PyTorch-Linear-style init. Returns (kernel_params, ref_params).

    kernel_params: weights (in, out) with hidden dims zero-padded to 128,
    cast to `compute_dtype` (bf16), hidden-layer biases bf16, final-layer
    bias f32 unpadded (final layer stays f32 end to end).
    ref_params: un-padded f32 copies for the pure-JAX reference.
    """
    h1_pad = _round_up(H1, LANE)
    h2_pad = _round_up(H2, LANE)
    ks = jax.random.split(key, 6)

    def linear(kw, kb, fan_in, fan_out):
        bound = 1.0 / math.sqrt(fan_in)
        w = jax.random.uniform(kw, (fan_in, fan_out), jnp.float32, -bound, bound)
        b = jax.random.uniform(kb, (1, fan_out), jnp.float32, -bound, bound)
        return w, b

    w1, b1 = linear(ks[0], ks[1], init_size, H1)
    w2, b2 = linear(ks[2], ks[3], H1, H2)
    w3, b3 = linear(ks[4], ks[5], H2, lat_size)

    def pad(a, rows, cols):
        return jnp.zeros((rows, cols), jnp.float32).at[: a.shape[0], : a.shape[1]].set(a)

    kernel_params = {
        "w1": pad(w1, init_size, h1_pad).astype(compute_dtype),
        "b1": pad(b1, 1, h1_pad).astype(compute_dtype),
        "w2": pad(w2, h1_pad, h2_pad).astype(compute_dtype),
        "b2": pad(b2, 1, h2_pad).astype(compute_dtype),
        "w3": pad(w3, h2_pad, lat_size).astype(compute_dtype),
        "b3": b3,                                   # f32, unpadded
    }
    ref_params = {"w1": w1, "b1": b1, "w2": w2, "b2": b2, "w3": w3, "b3": b3}
    return kernel_params, ref_params


def encoder_ref(x, p):
    h1 = jnp.maximum(x @ p["w1"] + p["b1"], 0.0)
    h2 = jnp.maximum(h1 @ p["w2"] + p["b2"], 0.0)
    return h2 @ p["w3"] + p["b3"]


if __name__ == "__main__":
    key = jax.random.PRNGKey(0)
    k_x, k_p = jax.random.split(key)

    batch, init_size, lat_size = 8, 32, 16
    x = jax.random.normal(k_x, (batch, init_size), jnp.float32)
    kernel_params, ref_params = init_params(k_p, init_size, lat_size)

    z = encoder_forward(x, kernel_params)
    jax.block_until_ready(z)

    z_ref = encoder_ref(x, ref_params)
    assert z.shape == (batch, lat_size)
    assert z.dtype == jnp.float32
    # bf16 weights/activations with f32 accumulation -> loose-ish tolerance
    # (deliberate precision trade-off vs the f32 PyTorch reference).
    assert jnp.allclose(z, z_ref, atol=5e-2, rtol=5e-2), float(
        jnp.max(jnp.abs(z - z_ref)))
    print("KERNEL_OK")
</pallas_src>

<mosaic_0001>
module attributes {stable_mosaic.version = 11 : i64} {
  func.func @_encoder_kernel(%arg0: i32, %arg1: memref<8x32xf32, #tpu.memory_space<vmem>>, %arg2: memref<32x128xbf16, #tpu.memory_space<vmem>>, %arg3: memref<1x128xbf16, #tpu.memory_space<vmem>>, %arg4: memref<128x128xbf16, #tpu.memory_space<vmem>>, %arg5: memref<1x128xbf16, #tpu.memory_space<vmem>>, %arg6: memref<128x16xbf16, #tpu.memory_space<vmem>>, %arg7: memref<1x16xf32, #tpu.memory_space<vmem>>, %arg8: memref<8x16xf32, #tpu.memory_space<vmem>>) attributes {dimension_semantics = [#tpu.dimension_semantics<parallel>], iteration_bounds = array<i64: 1>, scalar_prefetch = 0 : i64, scratch_operands = 0 : i64, tpu.core_type = #tpu.core_type<tc>, window_params = [{transform_indices = @transform_0, window_bounds = array<i64: 8, 32>}, {pipeline_mode = #tpu.pipeline_mode<synchronous>, transform_indices = @transform_1, window_bounds = array<i64: 32, 128>}, {pipeline_mode = #tpu.pipeline_mode<synchronous>, transform_indices = @transform_2, window_bounds = array<i64: 1, 128>}, {pipeline_mode = #tpu.pipeline_mode<synchronous>, transform_indices = @transform_3, window_bounds = array<i64: 128, 128>}, {pipeline_mode = #tpu.pipeline_mode<synchronous>, transform_indices = @transform_4, window_bounds = array<i64: 1, 128>}, {pipeline_mode = #tpu.pipeline_mode<synchronous>, transform_indices = @transform_5, window_bounds = array<i64: 128, 16>}, {pipeline_mode = #tpu.pipeline_mode<synchronous>, transform_indices = @transform_6, window_bounds = array<i64: 1, 16>}, {transform_indices = @transform_7, window_bounds = array<i64: 8, 16>}]} {
    %c0 = arith.constant 0 : index
    %c0_0 = arith.constant 0 : index
    %0 = vector.load %arg1[%c0, %c0_0] : memref<8x32xf32, #tpu.memory_space<vmem>>, vector<8x32xf32>
    %1 = arith.truncf %0 : vector<8x32xf32> to vector<8x32xbf16>
    %c0_1 = arith.constant 0 : index
    %c0_2 = arith.constant 0 : index
    %2 = vector.load %arg2[%c0_1, %c0_2] : memref<32x128xbf16, #tpu.memory_space<vmem>>, vector<32x128xbf16>
    %cst = arith.constant dense<0.000000e+00> : vector<8x128xf32>
    %3 = tpu.matmul %1, %2, %cst {dimension_numbers = #tpu.dot_dimension_numbers<[1], [0], [0], [1], [0, 0, 1, 1], [], []>} : vector<8x32xbf16>, vector<32x128xbf16>, vector<8x128xf32> -> vector<8x128xf32>
    %4 = arith.truncf %3 : vector<8x128xf32> to vector<8x128xbf16>
    %c0_3 = arith.constant 0 : index
    %c0_4 = arith.constant 0 : index
    %5 = vector.load %arg3[%c0_3, %c0_4] : memref<1x128xbf16, #tpu.memory_space<vmem>>, vector<1x128xbf16>
    %6 = vector.broadcast %5 : vector<1x128xbf16> to vector<8x128xbf16>
    %7 = arith.addf %4, %6 : vector<8x128xbf16>
    %cst_5 = arith.constant 0.000000e+00 : bf16
    %8 = vector.broadcast %cst_5 : bf16 to vector<8x128xbf16>
    %9 = arith.maximumf %7, %8 : vector<8x128xbf16>
    %c0_6 = arith.constant 0 : index
    %c0_7 = arith.constant 0 : index
    %10 = vector.load %arg4[%c0_6, %c0_7] : memref<128x128xbf16, #tpu.memory_space<vmem>>, vector<128x128xbf16>
    %cst_8 = arith.constant dense<0.000000e+00> : vector<8x128xf32>
    %11 = tpu.matmul %9, %10, %cst_8 {dimension_numbers = #tpu.dot_dimension_numbers<[1], [0], [0], [1], [0, 0, 1, 1], [], []>} : vector<8x128xbf16>, vector<128x128xbf16>, vector<8x128xf32> -> vector<8x128xf32>
    %12 = arith.truncf %11 : vector<8x128xf32> to vector<8x128xbf16>
    %c0_9 = arith.constant 0 : index
    %c0_10 = arith.constant 0 : index
    %13 = vector.load %arg5[%c0_9, %c0_10] : memref<1x128xbf16, #tpu.memory_space<vmem>>, vector<1x128xbf16>
    %14 = vector.broadcast %13 : vector<1x128xbf16> to vector<8x128xbf16>
    %15 = arith.addf %12, %14 : vector<8x128xbf16>
    %cst_11 = arith.constant 0.000000e+00 : bf16
    %16 = vector.broadcast %cst_11 : bf16 to vector<8x128xbf16>
    %17 = arith.maximumf %15, %16 : vector<8x128xbf16>
    %c0_12 = arith.constant 0 : index
    %c0_13 = arith.constant 0 : index
    %18 = vector.load %arg6[%c0_12, %c0_13] : memref<128x16xbf16, #tpu.memory_space<vmem>>, vector<128x16xbf16>
    %cst_14 = arith.constant dense<0.000000e+00> : vector<8x16xf32>
    %19 = tpu.matmul %17, %18, %cst_14 {dimension_numbers = #tpu.dot_dimension_numbers<[1], [0], [0], [1], [0, 0, 1, 1], [], []>} : vector<8x128xbf16>, vector<128x16xbf16>, vector<8x16xf32> -> vector<8x16xf32>
    %c0_15 = arith.constant 0 : index
    %c0_16 = arith.constant 0 : index
    %20 = vector.load %arg7[%c0_15, %c0_16] : memref<1x16xf32, #tpu.memory_space<vmem>>, vector<1x16xf32>
    %21 = vector.broadcast %20 : vector<1x16xf32> to vector<8x16xf32>
    %22 = arith.addf %19, %21 : vector<8x16xf32>
    %c0_17 = arith.constant 0 : index
    %c0_18 = arith.constant 0 : index
    %23 = vector.load %arg8[%c0_17, %c0_18] : memref<8x16xf32, #tpu.memory_space<vmem>>, vector<8x16xf32>
    tpu.vector_store %arg8[%c0_17, %c0_18], %22 {strides = array<i32>} : memref<8x16xf32, #tpu.memory_space<vmem>>, vector<8x16xf32>,
    return
  }
  func.func @transform_0(%arg0: i32) -> (i32, i32) {
    %c0_i32 = arith.constant 0 : i32
    %c0_i32_0 = arith.constant 0 : i32
    return %arg0, %c0_i32 : i32, i32
  }
  func.func @transform_1(%arg0: i32) -> (i32, i32) {
    %c0_i32 = arith.constant 0 : i32
    %c0_i32_0 = arith.constant 0 : i32
    %c0_i32_1 = arith.constant 0 : i32
    return %c0_i32, %c0_i32_0 : i32, i32
  }
  func.func @transform_2(%arg0: i32) -> (i32, i32) {
    %c0_i32 = arith.constant 0 : i32
    %c0_i32_0 = arith.constant 0 : i32
    %c0_i32_1 = arith.constant 0 : i32
    return %c0_i32, %c0_i32_0 : i32, i32
  }
  func.func @transform_3(%arg0: i32) -> (i32, i32) {
    %c0_i32 = arith.constant 0 : i32
    %c0_i32_0 = arith.constant 0 : i32
    %c0_i32_1 = arith.constant 0 : i32
    return %c0_i32, %c0_i32_0 : i32, i32
  }
  func.func @transform_4(%arg0: i32) -> (i32, i32) {
    %c0_i32 = arith.constant 0 : i32
    %c0_i32_0 = arith.constant 0 : i32
    %c0_i32_1 = arith.constant 0 : i32
    return %c0_i32, %c0_i32_0 : i32, i32
  }
  func.func @transform_5(%arg0: i32) -> (i32, i32) {
    %c0_i32 = arith.constant 0 : i32
    %c0_i32_0 = arith.constant 0 : i32
    %c0_i32_1 = arith.constant 0 : i32
    return %c0_i32, %c0_i32_0 : i32, i32
  }
  func.func @transform_6(%arg0: i32) -> (i32, i32) {
    %c0_i32 = arith.constant 0 : i32
    %c0_i32_0 = arith.constant 0 : i32
    %c0_i32_1 = arith.constant 0 : i32
    return %c0_i32, %c0_i32_0 : i32, i32
  }
  func.func @transform_7(%arg0: i32) -> (i32, i32) {
    %c0_i32 = arith.constant 0 : i32
    %c0_i32_0 = arith.constant 0 : i32
    return %arg0, %c0_i32 : i32, i32
  }
}

</mosaic_0001>

<bundles_post_ra>
// kernel: encoder_forward.1
= control target key start
LH: loop header
LB: loop body
LE: loop exit
PB: predicated region body
PF: predicated region fallthrough
CT: control target
= control target key end

     0   :  { %12 = vsyncpa [#allocation3], 0  ;;  %s672_s0 = inlined_call_operand.hbm [shape: f32[8,32], index: 0, kind: input, shape index: {}]   ;;  %s673_s1 = inlined_call_operand.vmem [shape: bf16[32,128], index: 1, kind: input, shape index: {}]   ;;  %s674_s2 = inlined_call_operand.vmem [shape: bf16[1,128], index: 2, kind: input, shape index: {}]   ;;  %s675_s3 = inlined_call_operand.vmem [shape: bf16[128,128], index: 3, kind: input, shape index: {}]   ;;  %s676_s4 = inlined_call_operand.vmem [shape: bf16[1,128], index: 4, kind: input, shape index: {}]   ;;  %s677_s5 = inlined_call_operand.vmem [shape: bf16[128,16], index: 5, kind: input, shape index: {}]   ;;  %s678_s6 = inlined_call_operand.vmem [shape: f32[1,16], index: 6, kind: input, shape index: {}]   ;;  %s679_s7 = inlined_call_operand.hbm [shape: f32[8,16], index: 7, kind: output, shape index: {}]  }
   0x1   :  { %13 = vsyncpa [#allocation4], 0  ;;  %s516_s24 = smov [#allocation2]   ;;  %s468_s28 = scalar_lea.hbm %s672_s0, 128 }
   0x2   :  { %s20_s25 = sshll.u32 %s516_s24, 4  ;;  %p469_p0 = scmp.ne.s32.totalorder %s672_s0, %s468_s28  ;;  %s21_s25 = int_to_ptr.vmem [resolvable:$true] %s20_s25 }
   0x3   :  { %p472_p1 = scmp.lt.u32.totalorder %s468_s28, %s672_s0 }
   0x5   :  { %p474_p2 = pnand %p472_p1, %p469_p0 }
   0x7   :  { %477 = shalt.err (!%p474_p2)
}
   0x8   :  { %s478_s10 = scalar_lea.vmem %s21_s25, 128  ;;  %p483_p4 = scmp.lt.s32.totalorder %s21_s25, %s21_s25 }
   0x9   :  { %p479_p3 = scmp.ne.s32.totalorder %s21_s25, %s478_s10  ;;  %p484_p5 = scmp.lt.s32.totalorder %s478_s10, %s478_s10 }
   0xb   :  { %p485_p6 = por %p484_p5, %p483_p4 }
   0xd   :  { %p486_p7 = pnand %p485_p6, %p479_p3 }
   0xf   :  { %489 = shalt.err (!%p486_p7)
}
  0x10   :  { %23 = dma.hbm_to_vmem [thread:$0]  %s672_s0, 128, %s21_s25, [#allocation3]  }
  0x11   :  { %512 = dma.done.wait [#allocation3], 128  }
  0x12   :  { %513 = vsyncadd [#allocation3], 4294967168  ;;  %v517_v0 = vmov 0.0   ;;  %vm518_vm0 = vmmov 0   ;;  %v450_v1 = vld [vmem:[%s673_s1] sm:$0xff]   ;;  %v451_v2 = vld [vmem:[%s673_s1 + $0x8] sm:$0xff]   ;;  %v107_v19 = vlaneseq }
  0x13   :  { %397 = vmatprep.subr.bf16.mxu0 %v517_v0  ;;  %401 = vmatprep.mubr.msk.bf16.mxu0 %vm518_vm0, %v517_v0  ;;  %v40_v3 = vld [vmem:[#allocation2] sm:$0xff]  ;;  %v453_v6 = vld [vmem:[%s675_s3 + $0x8] sm:$0xff]   ;;  %vm58_vm1 = vcmask 261120   ;;  %v454_v7 = vld [vmem:[%s675_s3 + $0x10] sm:$0xff]   ;;  %v519_v31 = vmov 0   ;;  %vm339_vm2 = vcmask 130048  }
  0x14   :  { %405 = vmatprep.subr.bf16.mxu1 %v517_v0  ;;  %421 = vmatprep.mubr.msk.bf16.mxu1 %vm518_vm0, %v517_v0  ;;  %v452_v4 = vld [vmem:[%s675_s3] sm:$0xff]   ;;  %v41_v5 = vpack.c.bf16 %v40_v3, %v40_v3  ;;  %v455_v8 = vld [vmem:[%s675_s3 + $0x18] sm:$0xff]   ;;  %v457_v10 = vld [vmem:[%s675_s3 + $0x28] sm:$0xff]   ;;  %v108_v20 = vshrl.u32 %v107_v19, 7 }
  0x15   :  { %398 = vmatpush3.bf16.msra.mxu0 %v450_v1  ;;  %406 = vmatpush3.bf16.msra.mxu1 %v452_v4  ;;  %v456_v9 = vld [vmem:[%s675_s3 + $0x20] sm:$0xff]   ;;  %v458_v11 = vld [vmem:[%s675_s3 + $0x30] sm:$0xff]   ;;  %v459_v12 = vld [vmem:[%s675_s3 + $0x38] sm:$0xff]  }
  0x16   :  { %399 = vmatprep.subr.bf16.mxu0 %v517_v0  ;;  %407 = vmatprep.subr.bf16.mxu1 %v517_v0  ;;  %v460_v13 = vld [vmem:[%s677_s5] sm:$0xff]   ;;  %v461_v14 = vld [vmem:[%s677_s5 + $0x8] sm:$0xff]   ;;  %v462_v15 = vld [vmem:[%s677_s5 + $0x10] sm:$0xff]   ;;  %v109_v23 = vsub.s32 0, %v108_v20 }
  0x17   :  { %v463_v16 = vld [vmem:[%s677_s5 + $0x18] sm:$0xff]   ;;  %v464_v17 = vld [vmem:[%s677_s5 + $0x20] sm:$0xff]   ;;  %v465_v18 = vld [vmem:[%s677_s5 + $0x28] sm:$0xff]  }
  0x18   :  { %v103_v21 = vld [vmem:[%s674_s2] sm:$0x1]  ;;  %v466_v33 = vld [vmem:[%s677_s5 + $0x30] sm:$0xff]   ;;  %v467_v34 = vld [vmem:[%s677_s5 + $0x38] sm:$0xff]   ;;  %s520_s5 = smov [#allocation5]  }
  0x19   :  { %400 = vmatpush3.bf16.msra.mxu0 %v451_v2  ;;  %408 = vmatpush3.bf16.msra.mxu1 %v453_v6  ;;  %v105_v22 = vpack.i.b16 %v103_v21, %v103_v21  ;;  %v218_v35 = vld [vmem:[%s676_s4] sm:$0x1]  ;;  %s347_s26 = sshll.u32 %s520_s5, 4  ;;  %s348_s26 = int_to_ptr.vmem [resolvable:$true] %s347_s26 }
  0x1a   :  { %425 = vmatprep.subr.bf16.mxu0 %v517_v0  ;;  %409 = vmatprep.subr.bf16.mxu1 %v517_v0  ;;  %v220_v36 = vpack.i.b16 %v218_v35, %v218_v35  ;;  %v367_v45 = vld [vmem:[%s678_s6] ss:$0 sm:$0xff]  ;;  %s490_s4 = scalar_lea.vmem %s348_s26, 128  ;;  %p495_p9 = scmp.lt.s32.totalorder %s348_s26, %s348_s26 }
  0x1b   :  { %v110_v24 = vrot.slane %v105_v22, %v109_v23  ;;  %p491_p8 = scmp.ne.s32.totalorder %s348_s26, %s490_s4  ;;  %p496_p10 = scmp.lt.s32.totalorder %s490_s4, %s490_s4 }
  0x1c   :  { %402 = vmatmul.mubr.msk.bf16.vlgmr.msra.gmra.mrb[0].mxu0 %vm58_vm1, %v41_v5  ;;  %v225_v37 = vrot.slane %v220_v36, %v109_v23 }
  0x1d   :  { %441 = vmatprep.mubr.msk.bf16.mxu0 %vm518_vm0, %v517_v0  ;;  %410 = vmatpush3.bf16.msra.mxu1 %v454_v7  ;;  %p497_p11 = por %p496_p10, %p495_p9 }
  0x1e   :  { %411 = vmatprep.subr.bf16.mxu1 %v517_v0  ;;  %426 = vmatpush3.bf16.msra.mxu0 %v460_v13 }
  0x1f   :  { %427 = vmatprep.subr.bf16.mxu0 %v517_v0  ;;  %p498_p12 = pnand %p497_p11, %p491_p8 }
  0x21   :  { %412 = vmatpush3.bf16.msra.mxu1 %v455_v8 }
  0x22   :  { %413 = vmatprep.subr.bf16.mxu1 %v517_v0  ;;  %428 = vmatpush3.bf16.msra.mxu0 %v461_v14 }
  0x23   :  { %429 = vmatprep.subr.bf16.mxu0 %v517_v0 }
  0x25   :  { %414 = vmatpush3.bf16.msra.mxu1 %v456_v9 }
  0x26   :  { %415 = vmatprep.subr.bf16.mxu1 %v517_v0  ;;  %430 = vmatpush3.bf16.msra.mxu0 %v462_v15 }
  0x27   :  { %431 = vmatprep.subr.bf16.mxu0 %v517_v0 }
  0x29   :  { %416 = vmatpush3.bf16.msra.mxu1 %v457_v10 }
  0x2a   :  { %417 = vmatprep.subr.bf16.mxu1 %v517_v0  ;;  %432 = vmatpush3.bf16.msra.mxu0 %v463_v16 }
  0x2b   :  { %433 = vmatprep.subr.bf16.mxu0 %v517_v0 }
  0x2d   :  { %418 = vmatpush3.bf16.msra.mxu1 %v458_v11 }
  0x2e   :  { %419 = vmatprep.subr.bf16.mxu1 %v517_v0  ;;  %434 = vmatpush3.bf16.msra.mxu0 %v464_v17 }
  0x2f   :  { %435 = vmatprep.subr.bf16.mxu0 %v517_v0 }
  0x31   :  { %420 = vmatpush3.bf16.msra.mxu1 %v459_v12 }
  0x32   :  { %436 = vmatpush3.bf16.msra.mxu0 %v465_v18 }
  0x33   :  { %437 = vmatprep.subr.bf16.mxu0 %v517_v0 }
  0x36   :  { %438 = vmatpush3.bf16.msra.mxu0 %v466_v33 }
  0x37   :  { %439 = vmatprep.subr.bf16.mxu0 %v517_v0 }
  0x3a   :  { %440 = vmatpush3.bf16.msra.mxu0 %v467_v34 }
  0xef   :  { %v96_v25 = vpop.f32.mrb[0].mxu0 }
  0xf0   :  { %v102_v26 = vpack.c.bf16 %v96_v25, %v96_v25  ;;  %v403_v27 = vpop.f32.mrb[1].mxu0 }
  0xf1   :  { %v99_v28 = vpop.f32.mrb[2].mxu0 }
  0xf2   :  { %v111_v29 = vadd.bf16 %v110_v24, %v102_v26  ;;  %v404_v30 = vpop.f32.mrb[3].mxu0 }
  0xf4   :  { %v112_v32 = vmax.bf16 %v519_v31, %v111_v29 }
  0xf6   :  { %422 = vmatmul.mubr.bf16.vlgmr.msra.gmra.mrb[0].mxu1 %v112_v32 }
 0x1c9   :  { %v211_v38 = vpop.f32.mrb[0].mxu1 }
 0x1ca   :  { %v217_v39 = vpack.c.bf16 %v211_v38, %v211_v38  ;;  %v423_v40 = vpop.f32.mrb[1].mxu1 }
 0x1cb   :  { %v214_v41 = vpop.f32.mrb[2].mxu1 }
 0x1cc   :  { %v226_v42 = vadd.bf16 %v225_v37, %v217_v39  ;;  %v424_v43 = vpop.f32.mrb[3].mxu1 }
 0x1ce   :  { %v227_v44 = vmax.bf16 %v519_v31, %v226_v42 }
 0x1d0   :  { %442 = vmatmul.mubr.bf16.vlgmr.msra.gmra.mrb[4].mxu0 %v227_v44 }
 0x2a3   :  { %v333_v46 = vpop.f32.mrb[4].mxu0 }
 0x2a4   :  { %v334_v47 = vadd.f32 %v367_v45, %v333_v46  ;;  %v443_v48 = vpop.f32.mrb[5].mxu0 }
 0x2a5   :  { %v336_v49 = vpop.f32.mrb[6].mxu0 }
 0x2a6   :  { %v444_v50 = vpop.f32.mrb[7].mxu0  ;;  %340 = vst.msk [vmem:[#allocation5] sm:$0xff] %vm339_vm2, %v334_v47 }
 0x2a7   :  { %501 = shalt.err (!%p498_p12)
}
 0x2a8   :  { %s502_s6 = scalar_lea.hbm %s679_s7, 128 }
 0x2a9   :  { %p503_p13 = scmp.ne.s32.totalorder %s679_s7, %s502_s6  ;;  %p506_p0 = scmp.lt.u32.totalorder %s502_s6, %s679_s7 }
 0x2ab   :  { %p508_p1 = pnand %p506_p0, %p503_p13 }
 0x2ad   :  { %511 = shalt.err (!%p508_p1)
}
 0x2ae   :  { %350 = dma.vmem_to_hbm [thread:$0]  %s348_s26, 128, %s679_s7, [#allocation4]  }
 0x2af   :  { %514 = dma.done.wait [#allocation4], 128  }
 0x2b0   :  { %515 = vsyncadd [#allocation4], 4294967168 }
 0x2b1   :  { %354 = vsyncpa [#allocation3], 1 }
 0x2b2   :  { %355 = vsyncpa [#allocation4], 1 }

</bundles_post_ra>
